<compile_context>
chip_gen: v6e
topology: v6e:2x2x1
jax: 0.10.0
libtpu: 0.0.40
codegen_flags: <defaults>
</compile_context>

<pallas_src>
import functools

import jax
import jax.numpy as jnp
import numpy as np
from jax.experimental import pallas as pl
from jax.experimental.pallas import tpu as pltpu


def _compiler_params(**kw):
    """Small compat shim: CompilerParams (new) vs TPUCompilerParams (old)."""
    cls = getattr(pltpu, "CompilerParams", None) or getattr(pltpu, "TPUCompilerParams", None)
    return cls(**kw) if cls is not None else None


# ---------------------------------------------------------------------------
# Fused Pallas kernel: the whole MultibranchTemporalBlock for one batch element
# ---------------------------------------------------------------------------
def _mtb_kernel(x_ref, w0_ref, b0_ref, w1_ref, b1_ref, *rest,
                K, dil, hmax, T, has_ds):
    """Whole residual block for one batch element; all intermediates in VMEM.

    x_ref : (1, Cin, T)     input slice (NCL layout, time on lanes)
    w0_ref: (Cout, K*Cin)   layer-0 weights: BN-folded, branch- & tap-stacked
    b0_ref: (Cout, 1)       layer-0 folded bias
    w1_ref: (Cout, K*Cout)  layer-1 weights (input channels = Cout)
    b1_ref: (Cout, 1)       layer-1 folded bias
    [ds_w_ref: (Cout, Cin), ds_b_ref: (Cout, 1)]   only when has_ds
    o_ref : (1, Cout, T)
    xpad_ref: (Cin,  T + 2*hmax)   VMEM scratch (zero halo = symmetric-chomped conv pad)
    hpad_ref: (Cout, T + 2*hmax)   VMEM scratch
    """
    if has_ds:
        ds_w_ref, ds_b_ref, o_ref, xpad_ref, hpad_ref = rest
    else:
        o_ref, xpad_ref, hpad_ref = rest

    x = x_ref[0].astype(jnp.float32)                               # (Cin, T)

    def conv_layer(src, pad_ref, w_ref, b_ref):
        # Zero halo + write interior (padding done in VMEM, not HBM), then gather
        # the K dilated taps into one (K*C, T) matrix -> a single MXU matmul for
        # all branches at once.  The stacked weights already contain the BN scale.
        pad_ref[...] = jnp.zeros_like(pad_ref)
        pad_ref[:, hmax:hmax + T] = src
        taps = jnp.concatenate(
            [pad_ref[:, m * dil:m * dil + T] for m in range(K)], axis=0)
        y = jnp.dot(w_ref[...].astype(jnp.float32), taps,
                    preferred_element_type=jnp.float32)
        return jnp.maximum(y + b_ref[...], 0.0)                    # (Cout, T)

    h0 = conv_layer(x, xpad_ref, w0_ref, b0_ref)    # layer 0 (+ dropout0 = identity)
    h1 = conv_layer(h0, hpad_ref, w1_ref, b1_ref)   # layer 1 (+ dropout1 = identity)

    if has_ds:
        res = jnp.dot(ds_w_ref[...].astype(jnp.float32), x,
                      preferred_element_type=jnp.float32) + ds_b_ref[...]
    else:
        res = x                                      # requires Cin == Cout (asserted)
    o_ref[0] = jnp.maximum(h1 + res, 0.0).astype(o_ref.dtype)


# ---------------------------------------------------------------------------
# Wrapper: BN folding, branch/tap weight stacking, pallas_call setup
# ---------------------------------------------------------------------------
def _fold_and_stack(branch_params, cin, cout_b, kernel_sizes, dilation, padding,
                    K, hmax, eps=1e-5):
    """Fold eval-mode BN into the conv weights and stack all branches / dilated taps
    into a single (Cout_total, K*cin) matrix + (Cout_total, 1) bias on the shared
    tap grid of the max-padded input."""
    num_k = len(kernel_sizes)
    cout = cout_b * num_k
    W = jnp.zeros((cout, K, cin), jnp.float32)
    B = jnp.zeros((cout,), jnp.float32)
    for idx, (k, p) in enumerate(zip(kernel_sizes, padding)):
        bp = branch_params[idx]
        scale = bp["gamma"] / jnp.sqrt(bp["var"] + eps)             # (cout_b,)
        w_f = bp["w"].astype(jnp.float32) * scale[:, None, None]    # (cout_b, cin, k)
        b_f = bp["beta"] + scale * (bp["b"] - bp["mean"])           # (cout_b,)
        off = (hmax - p // 2) // dilation                           # tap offset on shared grid
        rows = slice(idx * cout_b, (idx + 1) * cout_b)
        W = W.at[rows, off:off + k, :].set(jnp.transpose(w_f, (0, 2, 1)))
        B = B.at[rows].set(b_f)
    return W.reshape(cout, K * cin), B.reshape(cout, 1)


def multibranch_temporal_block(x, params, *, kernel_sizes, stride, dilation, padding):
    """Fused MultibranchTemporalBlock forward.  x: (N, n_inputs, T) -> (N, n_outputs, T)."""
    assert stride == 1, "TCN block uses stride=1"
    N, Cin, T = x.shape
    num_k = len(kernel_sizes)
    cout_b = params["cbcr0"][0]["w"].shape[0]
    Cout = cout_b * num_k
    d = dilation

    for k, p in zip(kernel_sizes, padding):
        assert p == d * (k - 1), "expected TCN padding = dilation*(kernel_size-1)"
        assert p % 2 == 0, "symmetric chomp requires even padding"
    hmax = max(p // 2 for p in padding)
    for p in padding:
        # TODO(synk): mixed-parity kernel-size sets would need a finer shared tap grid.
        assert (hmax - p // 2) % d == 0, "branch taps must align on the shared dilated grid"
    K = max((hmax - p // 2) // d + k for k, p in zip(kernel_sizes, padding))
    assert (K - 1) * d <= 2 * hmax

    w0, b0 = _fold_and_stack(params["cbcr0"], Cin, cout_b, kernel_sizes, d, padding, K, hmax)
    w1, b1 = _fold_and_stack(params["cbcr1"], Cout, cout_b, kernel_sizes, d, padding, K, hmax)

    has_ds = params.get("ds_w") is not None
    if not has_ds:
        assert Cin == Cout, "identity residual requires n_inputs == n_outputs"

    kern = functools.partial(_mtb_kernel, K=K, dil=d, hmax=hmax, T=T, has_ds=has_ds)

    in_specs = [
        pl.BlockSpec((1, Cin, T), lambda n: (n, 0, 0)),        # x (per-batch tile)
        pl.BlockSpec((Cout, K * Cin), lambda n: (0, 0)),       # w0 (resident)
        pl.BlockSpec((Cout, 1), lambda n: (0, 0)),             # b0
        pl.BlockSpec((Cout, K * Cout), lambda n: (0, 0)),      # w1
        pl.BlockSpec((Cout, 1), lambda n: (0, 0)),             # b1
    ]
    args = [x, w0, b0, w1, b1]
    if has_ds:
        ds_w = params["ds_w"][:, :, 0].astype(jnp.float32)     # (Cout, Cin) 1x1 conv
        ds_b = params["ds_b"].astype(jnp.float32).reshape(Cout, 1)
        in_specs += [pl.BlockSpec((Cout, Cin), lambda n: (0, 0)),
                     pl.BlockSpec((Cout, 1), lambda n: (0, 0))]
        args += [ds_w, ds_b]

    grid_spec = pltpu.PrefetchScalarGridSpec(
        num_scalar_prefetch=0,
        grid=(N,),
        in_specs=in_specs,
        out_specs=pl.BlockSpec((1, Cout, T), lambda n: (n, 0, 0)),
        scratch_shapes=[pltpu.VMEM((Cin, T + 2 * hmax), jnp.float32),
                        pltpu.VMEM((Cout, T + 2 * hmax), jnp.float32)],
    )
    return pl.pallas_call(
        kern,
        out_shape=jax.ShapeDtypeStruct((N, Cout, T), x.dtype),
        grid_spec=grid_spec,
        compiler_params=_compiler_params(dimension_semantics=("parallel",)),
    )(*args)


# ---------------------------------------------------------------------------
# Pure-JAX reference (for correctness check)
# ---------------------------------------------------------------------------
def _ref_cbcr(x, w, b, gamma, beta, mean, var, stride, padding, dilation, eps=1e-5):
    out = jax.lax.conv_general_dilated(
        x, w, (stride,), [(padding, padding)], rhs_dilation=(dilation,),
        dimension_numbers=("NCH", "OIH", "NCH"))
    out = out + b[None, :, None]
    out = (out - mean[None, :, None]) / jnp.sqrt(var[None, :, None] + eps) \
          * gamma[None, :, None] + beta[None, :, None]
    if padding > 0:
        out = out[:, :, padding // 2: -(padding // 2)]
    return jnp.maximum(out, 0.0)


def _ref_block(x, params, kernel_sizes, stride, dilation, padding):
    def layer(inp, lp):
        outs = [_ref_cbcr(inp, p["w"], p["b"], p["gamma"], p["beta"], p["mean"],
                          p["var"], stride, padding[i], dilation)
                for i, p in enumerate(lp)]
        return jnp.concatenate(outs, axis=1)

    out0 = layer(x, params["cbcr0"])
    out1 = layer(out0, params["cbcr1"])
    if params.get("ds_w") is not None:
        res = jax.lax.conv_general_dilated(
            x, params["ds_w"], (1,), [(0, 0)],
            dimension_numbers=("NCH", "OIH", "NCH")) + params["ds_b"][None, :, None]
    else:
        res = x
    return jnp.maximum(out1 + res, 0.0)


# ---------------------------------------------------------------------------
# Parameter construction + main
# ---------------------------------------------------------------------------
def _make_branch_params(key, cin, cout, k):
    k0, k1, k2, k3, k4, k5 = jax.random.split(key, 6)
    return {
        "w": jax.random.normal(k0, (cout, cin, k), jnp.float32) * 0.2,
        "b": jax.random.normal(k1, (cout,), jnp.float32) * 0.1,
        "gamma": 1.0 + 0.1 * jax.random.normal(k2, (cout,), jnp.float32),
        "beta": 0.1 * jax.random.normal(k3, (cout,), jnp.float32),
        "mean": 0.1 * jax.random.normal(k4, (cout,), jnp.float32),
        "var": 0.5 + jnp.abs(jax.random.normal(k5, (cout,), jnp.float32)),
    }


if __name__ == "__main__":
    # Small config consistent with the module's constructor.
    N, T = 2, 16
    n_inputs, n_outputs = 8, 8
    kernel_sizes = (3, 5)
    stride, dilation = 1, 1
    padding = tuple(dilation * (k - 1) for k in kernel_sizes)   # (2, 4) -> even, symm chomp
    num_kernels = len(kernel_sizes)
    n_branch = n_outputs // num_kernels

    root = jax.random.PRNGKey(0)
    keys = jax.random.split(root, 2 * num_kernels + 3)

    params = {
        "cbcr0": [_make_branch_params(keys[i], n_inputs, n_branch, kernel_sizes[i])
                  for i in range(num_kernels)],
        "cbcr1": [_make_branch_params(keys[num_kernels + i], n_outputs, n_branch,
                                      kernel_sizes[i]) for i in range(num_kernels)],
    }
    # downsample exists because n_inputs // num_kernels != n_outputs
    if n_inputs // num_kernels != n_outputs:
        params["ds_w"] = jax.random.normal(keys[-3], (n_outputs, n_inputs, 1), jnp.float32) * 0.2
        params["ds_b"] = jax.random.normal(keys[-2], (n_outputs,), jnp.float32) * 0.1
    else:
        params["ds_w"] = None
        params["ds_b"] = None

    x = jax.random.normal(keys[-1], (N, n_inputs, T), jnp.float32)

    out = multibranch_temporal_block(
        x, params, kernel_sizes=kernel_sizes, stride=stride,
        dilation=dilation, padding=padding)
    out = jax.block_until_ready(out)

    ref = jax.block_until_ready(
        _ref_block(x, params, kernel_sizes, stride, dilation, padding))

    assert out.shape == (N, n_outputs, T), out.shape
    np.testing.assert_allclose(np.asarray(out), np.asarray(ref), rtol=1e-4, atol=1e-4)
    print("KERNEL_OK")
</pallas_src>

<mosaic_0001>
module attributes {stable_mosaic.version = 11 : i64} {
  func.func @_mtb_kernel(%arg0: i32, %arg1: memref<1x8x16xf32, #tpu.memory_space<vmem>>, %arg2: memref<8x40xf32, #tpu.memory_space<vmem>>, %arg3: memref<8x1xf32, #tpu.memory_space<vmem>>, %arg4: memref<8x40xf32, #tpu.memory_space<vmem>>, %arg5: memref<8x1xf32, #tpu.memory_space<vmem>>, %arg6: memref<8x8xf32, #tpu.memory_space<vmem>>, %arg7: memref<8x1xf32, #tpu.memory_space<vmem>>, %arg8: memref<1x8x16xf32, #tpu.memory_space<vmem>>, %arg9: memref<8x20xf32, #tpu.memory_space<vmem>>, %arg10: memref<8x20xf32, #tpu.memory_space<vmem>>) attributes {dimension_semantics = [#tpu.dimension_semantics<parallel>], iteration_bounds = array<i64: 2>, scalar_prefetch = 0 : i64, scratch_operands = 2 : i64, tpu.core_type = #tpu.core_type<tc>, window_params = [{transform_indices = @transform_0, window_bounds = array<i64: 1, 8, 16>}, {pipeline_mode = #tpu.pipeline_mode<synchronous>, transform_indices = @transform_1, window_bounds = array<i64: 8, 40>}, {pipeline_mode = #tpu.pipeline_mode<synchronous>, transform_indices = @transform_2, window_bounds = array<i64: 8, 1>}, {pipeline_mode = #tpu.pipeline_mode<synchronous>, transform_indices = @transform_3, window_bounds = array<i64: 8, 40>}, {pipeline_mode = #tpu.pipeline_mode<synchronous>, transform_indices = @transform_4, window_bounds = array<i64: 8, 1>}, {pipeline_mode = #tpu.pipeline_mode<synchronous>, transform_indices = @transform_5, window_bounds = array<i64: 8, 8>}, {pipeline_mode = #tpu.pipeline_mode<synchronous>, transform_indices = @transform_6, window_bounds = array<i64: 8, 1>}, {transform_indices = @transform_7, window_bounds = array<i64: 1, 8, 16>}]} {
    %c0 = arith.constant 0 : index
    %c0_0 = arith.constant 0 : index
    %c0_1 = arith.constant 0 : index
    %0 = vector.load %arg1[%c0, %c0_0, %c0_1] : memref<1x8x16xf32, #tpu.memory_space<vmem>>, vector<1x8x16xf32>
    %1 = vector.shape_cast %0 : vector<1x8x16xf32> to vector<8x16xf32>
    %cst = arith.constant 0.000000e+00 : f32
    %2 = vector.broadcast %cst : f32 to vector<8x20xf32>
    %c0_2 = arith.constant 0 : index
    %c0_3 = arith.constant 0 : index
    %3 = vector.load %arg9[%c0_2, %c0_3] : memref<8x20xf32, #tpu.memory_space<vmem>>, vector<8x20xf32>
    tpu.vector_store %arg9[%c0_2, %c0_3], %2 {strides = array<i32>} : memref<8x20xf32, #tpu.memory_space<vmem>>, vector<8x20xf32>,
    %c0_4 = arith.constant 0 : index
    %c2 = arith.constant 2 : index
    %4 = vector.load %arg9[%c0_4, %c2] : memref<8x20xf32, #tpu.memory_space<vmem>>, vector<8x16xf32>
    tpu.vector_store %arg9[%c0_4, %c2], %1 {strides = array<i32>} : memref<8x20xf32, #tpu.memory_space<vmem>>, vector<8x16xf32>,
    %c0_5 = arith.constant 0 : index
    %c0_6 = arith.constant 0 : index
    %5 = vector.load %arg9[%c0_5, %c0_6] : memref<8x20xf32, #tpu.memory_space<vmem>>, vector<8x16xf32>
    %c0_7 = arith.constant 0 : index
    %c1 = arith.constant 1 : index
    %6 = vector.load %arg9[%c0_7, %c1] : memref<8x20xf32, #tpu.memory_space<vmem>>, vector<8x16xf32>
    %c0_8 = arith.constant 0 : index
    %c2_9 = arith.constant 2 : index
    %7 = vector.load %arg9[%c0_8, %c2_9] : memref<8x20xf32, #tpu.memory_space<vmem>>, vector<8x16xf32>
    %c0_10 = arith.constant 0 : index
    %c3 = arith.constant 3 : index
    %8 = vector.load %arg9[%c0_10, %c3] : memref<8x20xf32, #tpu.memory_space<vmem>>, vector<8x16xf32>
    %c0_11 = arith.constant 0 : index
    %c4 = arith.constant 4 : index
    %9 = vector.load %arg9[%c0_11, %c4] : memref<8x20xf32, #tpu.memory_space<vmem>>, vector<8x16xf32>
    %10 = tpu.concatenate %5, %6, %7, %8, %9 in 0 : vector<8x16xf32>, vector<8x16xf32>, vector<8x16xf32>, vector<8x16xf32>, vector<8x16xf32> -> vector<40x16xf32>
    %c0_12 = arith.constant 0 : index
    %c0_13 = arith.constant 0 : index
    %11 = vector.load %arg2[%c0_12, %c0_13] : memref<8x40xf32, #tpu.memory_space<vmem>>, vector<8x40xf32>
    %cst_14 = arith.constant dense<0.000000e+00> : vector<8x16xf32>
    %12 = tpu.matmul %11, %10, %cst_14 {dimension_numbers = #tpu.dot_dimension_numbers<[1], [0], [0], [1], [0, 0, 1, 1], [], []>} : vector<8x40xf32>, vector<40x16xf32>, vector<8x16xf32> -> vector<8x16xf32>
    %c0_15 = arith.constant 0 : index
    %c0_16 = arith.constant 0 : index
    %13 = vector.load %arg3[%c0_15, %c0_16] : memref<8x1xf32, #tpu.memory_space<vmem>>, vector<8x1xf32>
    %14 = vector.broadcast %13 : vector<8x1xf32> to vector<8x16xf32>
    %15 = arith.addf %12, %14 : vector<8x16xf32>
    %cst_17 = arith.constant 0.000000e+00 : f32
    %16 = vector.broadcast %cst_17 : f32 to vector<8x16xf32>
    %17 = arith.maximumf %15, %16 : vector<8x16xf32>
    %cst_18 = arith.constant 0.000000e+00 : f32
    %18 = vector.broadcast %cst_18 : f32 to vector<8x20xf32>
    %c0_19 = arith.constant 0 : index
    %c0_20 = arith.constant 0 : index
    %19 = vector.load %arg10[%c0_19, %c0_20] : memref<8x20xf32, #tpu.memory_space<vmem>>, vector<8x20xf32>
    tpu.vector_store %arg10[%c0_19, %c0_20], %18 {strides = array<i32>} : memref<8x20xf32, #tpu.memory_space<vmem>>, vector<8x20xf32>,
    %c0_21 = arith.constant 0 : index
    %c2_22 = arith.constant 2 : index
    %20 = vector.load %arg10[%c0_21, %c2_22] : memref<8x20xf32, #tpu.memory_space<vmem>>, vector<8x16xf32>
    tpu.vector_store %arg10[%c0_21, %c2_22], %17 {strides = array<i32>} : memref<8x20xf32, #tpu.memory_space<vmem>>, vector<8x16xf32>,
    %c0_23 = arith.constant 0 : index
    %c0_24 = arith.constant 0 : index
    %21 = vector.load %arg10[%c0_23, %c0_24] : memref<8x20xf32, #tpu.memory_space<vmem>>, vector<8x16xf32>
    %c0_25 = arith.constant 0 : index
    %c1_26 = arith.constant 1 : index
    %22 = vector.load %arg10[%c0_25, %c1_26] : memref<8x20xf32, #tpu.memory_space<vmem>>, vector<8x16xf32>
    %c0_27 = arith.constant 0 : index
    %c2_28 = arith.constant 2 : index
    %23 = vector.load %arg10[%c0_27, %c2_28] : memref<8x20xf32, #tpu.memory_space<vmem>>, vector<8x16xf32>
    %c0_29 = arith.constant 0 : index
    %c3_30 = arith.constant 3 : index
    %24 = vector.load %arg10[%c0_29, %c3_30] : memref<8x20xf32, #tpu.memory_space<vmem>>, vector<8x16xf32>
    %c0_31 = arith.constant 0 : index
    %c4_32 = arith.constant 4 : index
    %25 = vector.load %arg10[%c0_31, %c4_32] : memref<8x20xf32, #tpu.memory_space<vmem>>, vector<8x16xf32>
    %26 = tpu.concatenate %21, %22, %23, %24, %25 in 0 : vector<8x16xf32>, vector<8x16xf32>, vector<8x16xf32>, vector<8x16xf32>, vector<8x16xf32> -> vector<40x16xf32>
    %c0_33 = arith.constant 0 : index
    %c0_34 = arith.constant 0 : index
    %27 = vector.load %arg4[%c0_33, %c0_34] : memref<8x40xf32, #tpu.memory_space<vmem>>, vector<8x40xf32>
    %cst_35 = arith.constant dense<0.000000e+00> : vector<8x16xf32>
    %28 = tpu.matmul %27, %26, %cst_35 {dimension_numbers = #tpu.dot_dimension_numbers<[1], [0], [0], [1], [0, 0, 1, 1], [], []>} : vector<8x40xf32>, vector<40x16xf32>, vector<8x16xf32> -> vector<8x16xf32>
    %c0_36 = arith.constant 0 : index
    %c0_37 = arith.constant 0 : index
    %29 = vector.load %arg5[%c0_36, %c0_37] : memref<8x1xf32, #tpu.memory_space<vmem>>, vector<8x1xf32>
    %30 = vector.broadcast %29 : vector<8x1xf32> to vector<8x16xf32>
    %31 = arith.addf %28, %30 : vector<8x16xf32>
    %cst_38 = arith.constant 0.000000e+00 : f32
    %32 = vector.broadcast %cst_38 : f32 to vector<8x16xf32>
    %33 = arith.maximumf %31, %32 : vector<8x16xf32>
    %c0_39 = arith.constant 0 : index
    %c0_40 = arith.constant 0 : index
    %34 = vector.load %arg6[%c0_39, %c0_40] : memref<8x8xf32, #tpu.memory_space<vmem>>, vector<8x8xf32>
    %cst_41 = arith.constant dense<0.000000e+00> : vector<8x16xf32>
    %35 = tpu.matmul %34, %1, %cst_41 {dimension_numbers = #tpu.dot_dimension_numbers<[1], [0], [0], [1], [0, 0, 1, 1], [], []>} : vector<8x8xf32>, vector<8x16xf32>, vector<8x16xf32> -> vector<8x16xf32>
    %c0_42 = arith.constant 0 : index
    %c0_43 = arith.constant 0 : index
    %36 = vector.load %arg7[%c0_42, %c0_43] : memref<8x1xf32, #tpu.memory_space<vmem>>, vector<8x1xf32>
    %37 = vector.broadcast %36 : vector<8x1xf32> to vector<8x16xf32>
    %38 = arith.addf %35, %37 : vector<8x16xf32>
    %39 = arith.addf %33, %38 : vector<8x16xf32>
    %cst_44 = arith.constant 0.000000e+00 : f32
    %40 = vector.broadcast %cst_44 : f32 to vector<8x16xf32>
    %41 = arith.maximumf %39, %40 : vector<8x16xf32>
    %c0_45 = arith.constant 0 : index
    %c0_46 = arith.constant 0 : index
    %c0_47 = arith.constant 0 : index
    %42 = vector.load %arg8[%c0_45, %c0_46, %c0_47] : memref<1x8x16xf32, #tpu.memory_space<vmem>>, vector<1x8x16xf32>
    %43 = vector.shape_cast %42 : vector<1x8x16xf32> to vector<8x16xf32>
    %44 = vector.shape_cast %41 : vector<8x16xf32> to vector<1x8x16xf32>
    tpu.vector_store %arg8[%c0_45, %c0_46, %c0_47], %44 {strides = array<i32>} : memref<1x8x16xf32, #tpu.memory_space<vmem>>, vector<1x8x16xf32>,
    return
  }
  func.func @transform_0(%arg0: i32) -> (i32, i32, i32) {
    %c0_i32 = arith.constant 0 : i32
    %c0_i32_0 = arith.constant 0 : i32
    %c0_i32_1 = arith.constant 0 : i32
    return %arg0, %c0_i32, %c0_i32_0 : i32, i32, i32
  }
  func.func @transform_1(%arg0: i32) -> (i32, i32) {
    %c0_i32 = arith.constant 0 : i32
    %c0_i32_0 = arith.constant 0 : i32
    %c0_i32_1 = arith.constant 0 : i32
    return %c0_i32, %c0_i32_0 : i32, i32
  }
  func.func @transform_2(%arg0: i32) -> (i32, i32) {
    %c0_i32 = arith.constant 0 : i32
    %c0_i32_0 = arith.constant 0 : i32
    %c0_i32_1 = arith.constant 0 : i32
    return %c0_i32, %c0_i32_0 : i32, i32
  }
  func.func @transform_3(%arg0: i32) -> (i32, i32) {
    %c0_i32 = arith.constant 0 : i32
    %c0_i32_0 = arith.constant 0 : i32
    %c0_i32_1 = arith.constant 0 : i32
    return %c0_i32, %c0_i32_0 : i32, i32
  }
  func.func @transform_4(%arg0: i32) -> (i32, i32) {
    %c0_i32 = arith.constant 0 : i32
    %c0_i32_0 = arith.constant 0 : i32
    %c0_i32_1 = arith.constant 0 : i32
    return %c0_i32, %c0_i32_0 : i32, i32
  }
  func.func @transform_5(%arg0: i32) -> (i32, i32) {
    %c0_i32 = arith.constant 0 : i32
    %c0_i32_0 = arith.constant 0 : i32
    %c0_i32_1 = arith.constant 0 : i32
    return %c0_i32, %c0_i32_0 : i32, i32
  }
  func.func @transform_6(%arg0: i32) -> (i32, i32) {
    %c0_i32 = arith.constant 0 : i32
    %c0_i32_0 = arith.constant 0 : i32
    %c0_i32_1 = arith.constant 0 : i32
    return %c0_i32, %c0_i32_0 : i32, i32
  }
  func.func @transform_7(%arg0: i32) -> (i32, i32, i32) {
    %c0_i32 = arith.constant 0 : i32
    %c0_i32_0 = arith.constant 0 : i32
    %c0_i32_1 = arith.constant 0 : i32
    return %arg0, %c0_i32, %c0_i32_0 : i32, i32, i32
  }
}

</mosaic_0001>

<bundles_post_ra>
// kernel: tpu_custom_call.1
= control target key start
LH: loop header
LB: loop body
LE: loop exit
PB: predicated region body
PF: predicated region fallthrough
CT: control target
= control target key end

     0   :  { %12 = vsyncpa [#allocation5], 0  ;;  %s1078_s0 = inlined_call_operand.vmem [shape: f32[2,8,16], index: 0, kind: input, shape index: {}]   ;;  %s1079_s1 = inlined_call_operand.vmem [shape: f32[8,40], index: 1, kind: input, shape index: {}]   ;;  %s1080_s2 = inlined_call_operand.vmem [shape: f32[8,1], index: 2, kind: input, shape index: {}]   ;;  %s1081_s3 = inlined_call_operand.vmem [shape: f32[8,40], index: 3, kind: input, shape index: {}]   ;;  %s1082_s4 = inlined_call_operand.vmem [shape: f32[8,1], index: 4, kind: input, shape index: {}]   ;;  %s1083_s5 = inlined_call_operand.hbm [shape: f32[8,8], index: 5, kind: input, shape index: {}]   ;;  %s1084_s6 = inlined_call_operand.vmem [shape: f32[8,1], index: 6, kind: input, shape index: {}]   ;;  %s1085_s7 = inlined_call_operand.hbm [shape: f32[2,8,16], index: 7, kind: output, shape index: {}]  }
   0x1   :  { %13 = vsyncpa [#allocation6], 0 }
   0x2   :  { %15 = vsyncpa [#allocation6 + $0x1], 0  ;;  %s925_s24 = smov 0   ;;  %s927_s25 = smov 0  }
   0x3   :  { %s929_s26 = smov 0   ;;  %s931_s27 = smov 0  }
   0x4 LB: > { %s946_s28 = sadd.s32 4294967295, %s873_s27   ;;  %s663_s29 = sadd.s32 4294967294, %s873_s27   ;;  %s873_s27 = sphi %s931_s27, %s1093_s27   ;;  %s869_s26 = sphi %s929_s26, %s1092_s26   ;;  %s865_s25 = sphi %s927_s25, %s1091_s25   ;;  %s861_s24 = sphi %s925_s24, %s1090_s24  }
   0x5   : > { %s950_s30 = sadd.s32 1, %s873_s27   ;;  %s180_s8 = sadd.s32 1, %s869_s26 }
   0x6   : > { %s177_s9 = ssub.s32 %s873_s27, %s950_s30  ;;  %p190_p0 = scmp.ne.s32.totalorder %s869_s26, %s865_s25 }
   0x7   : > { %p178_p1 = scmp.eq.s32.totalorder %s177_s9, 0  ;;  %p191_p2 = scmp.eq.s32.totalorder %s946_s28, 1 }
   0x8   : > { %p196_p3 = scmp.ne.s32.totalorder %s865_s25, %s861_s24  ;;  %p197_p4 = scmp.eq.s32.totalorder %s663_s29, 1 }
   0x9   : > { %s961_s10 = scalar_select %p178_p1, %s869_s26, %s180_s8  }
   0xa   : > { %p963_p5 = por %p191_p2, %p190_p0  ;;  %p967_p6 = por %p197_p4, %p196_p3 }
   0xb   : > { %p664_p7 = scmp.ge.s32.totalorder %s873_s27, 1  ;;  %p204_p8 = scmp.lt.s32.totalorder %s873_s27, 3 }
   0xc   : > { %s1087_s12 = scalar_select %p967_p6, 1, 0 }
   0xd   : > { %p737_p9 = scmp.eq.s32.totalorder %s946_s28, 0  ;;  %p974_p10 = pnand %p664_p7, %p204_p8 }
   0xe   : > { %s875_s14 = smov [#allocation4]  }
   0xf   : > { %s229_s15 = sshll.u32 %s875_s14, 4  ;;  %p729_p11 = pneg %p974_p10  ;;  %s230_s15 = int_to_ptr.vmem [resolvable:$true] %s229_s15 }
  0x10   : > { %s794_s16 = scalar_lea.vmem %s230_s15, 128  ;;  %p802_p3 = scmp.lt.s32.totalorder %s230_s15, %s230_s15 }
  0x11   : > { %p730_p12 = pnand %p737_p9, %p729_p11  ;;  %p795_p0 = scmp.ne.s32.totalorder %s230_s15, %s794_s16 }
  0x12   : > { %p803_p4 = scmp.lt.s32.totalorder %s794_s16, %s794_s16 }
  0x13   : > { %p785_p13 = pneg %p730_p12 }
  0x14   : > { %p804_p6 = por %p803_p4, %p802_p3 }
  0x15   : > { %p797_p1 = pnand %p795_p0, %p785_p13 }
  0x17   : > { %p798_p2 = pneg %p797_p1 }
  0x19   : > { %p805_p7 = pnand %p804_p6, %p798_p2 }
  0x1b   : > { %808 = shalt.err (!%p805_p7)
}
  0x1c   : > { %732 = dma.hbm_to_vmem [thread:$0]  (!%p730_p12), %s1083_s5, 128, %s230_s15, [#allocation5]  }
  0x1d   : > { %252 = sbr.rel (%p974_p10) target bundleno = 947 (0x3b3), region = 48 }
  0x22   : > { %852 = dma.done.wait (%p737_p9), [#allocation5], 128  }
  0x23   : > { %854 = vsyncadd (%p737_p9), [#allocation5], 4294967168  ;;  %p283_p8 = scmp.lt.s32.totalorder %s946_s28, 1  ;;  %vm288_vm0 = vcmask 162816   ;;  %v876_v0 = vmov 0.0   ;;  %s877_s29 = smov 2  }
  0x24   : > { %289 = vst.msk [vmem:[#allocation2] sm:$0xff] %vm288_vm0, %v876_v0  ;;  %392 = vst.msk [vmem:[#allocation3] sm:$0xff] %vm288_vm0, %v876_v0  ;;  %692 = vmatprep.subr.mxu0 %v876_v0  ;;  %705 = vmatprep.subr.mxu1 %v876_v0  ;;  %vm294_vm1 = vcmask 146448   ;;  %vm878_vm2 = vmmov 0   ;;  %v879_v3 = vmov 0   ;;  %s880_s8 = smov 125  }
  0x25   : > { %s284_s19 = scalar_select %p283_p8, %s946_s28, 1  ;;  %702 = vmatprep.mubr.msk.f32.mxu0 %vm878_vm2, %v876_v0  ;;  %715 = vmatprep.mubr.msk.f32.mxu1 %vm878_vm2, %v876_v0  ;;  %v311_v5 = vld [vmem:[%s1080_s2] sm:$0xff]  ;;  %vm317_vm3 = vcmask 326656   ;;  %v493_v17 = vld [vmem:[#allocation4] sm:$0xff]  ;;  %vm500_vm4 = vcmask 64512   ;;  %vm576_vm5 = vcmask 130048  }
  0x26   : > { %781 = vset.pattern.permute.xlu1 %v879_v3  ;;  %782 = vset.pattern.permute.xlu0 %v879_v3  ;;  %s881_s9 = smov 124   ;;  %s882_s13 = smov 126   ;;  %v310_v10 = vld [vmem:[%s1079_s1] sm:$0xff] }
  0x27   : > { %s670_s20 = sshll.u32 %s284_s19, 3  ;;  %s883_s14 = smov 127   ;;  %v413_v19 = vld [vmem:[%s1082_s4] sm:$0xff] }
  0x28   : > { %s286_s23 = scalar_lea.vmem %s1078_s0, %s670_s20  ;;  %v494_v20 = vld [vmem:[%s1084_s6] sm:$0xff]  ;;  %s884_s21 = smov [#allocation7]  }
  0x29   : > { %v287_v1 = vld [vmem:[%s286_s23] sm:$0xff]  ;;  %s813_s22 = sshll.u32 %s884_s21, 4  ;;  %s814_s22 = int_to_ptr.vmem [resolvable:$false] %s813_s22 }
  0x2a   : > { %291 = vrot.lane.b32.xlu0 %v287_v1, %s877_s29  ;;  %v412_v25 = vld [vmem:[%s1081_s3] sm:$0xff] }
  0x9c   : > { %v292_v2 = vpop.permute.xlu0 %291 }
  0x9d   : > { %295 = vst.msk [vmem:[#allocation2] sm:$0xff] %vm294_vm1, %v292_v2 }
  0xa4   : > { %v296_v4 = vld [vmem:[#allocation2] sm:$0xff] }
  0xa5   : > { %304 = vrot.lane.b32.xlu1 %v296_v4, %s880_s8  ;;  %307 = vrot.lane.b32.xlu0 %v296_v4, %s881_s9 }
  0xa9   : > { %301 = vrot.lane.b32.xlu1 %v296_v4, %s882_s13  ;;  %298 = vrot.lane.b32.xlu0 %v296_v4, %s883_s14 }
  0xad   : > { %314 = vperm.xlu1 %781, %v311_v5  }
 0x117   : > { %v305_v6 = vpop.permute.xlu1 %304  ;;  %v308_v7 = vpop.permute.xlu0 %307 }
 0x118   : > { %693 = vmatpush3.msra.mxu0 %v308_v7 }
 0x119   : > { %694 = vmatprep.subr.mxu0 %v876_v0 }
 0x11a   : > { %695 = vmatpush3.msra.mxu0 %v305_v6 }
 0x11b   : > { %v302_v8 = vpop.permute.xlu1 %301  ;;  %696 = vmatprep.subr.mxu0 %v876_v0  ;;  %v299_v9 = vpop.permute.xlu0 %298 }
 0x11c   : > { %697 = vmatpush3.msra.mxu0 %v302_v8 }
 0x11d   : > { %698 = vmatprep.subr.mxu0 %v876_v0 }
 0x11e   : > { %699 = vmatpush3.msra.mxu0 %v299_v9 }
 0x11f   : > { %700 = vmatprep.subr.mxu0 %v876_v0 }
 0x120   : > { %701 = vmatpush3.msra.mxu0 %v296_v4 }
 0x121   : > { %703 = vmatmul.mubr.msk.f32.vlgmr.msra.gmra.mxu0 %vm317_vm3, %v310_v10  ;;  %718 = vmatprep.subr.mxu0 %v876_v0 }
 0x122   : > { %719 = vmatpush3.msra.mxu0 %v287_v1  ;;  %720 = vmatprep.mubr.msk.f32.mxu0 %vm878_vm2, %v876_v0 }
 0x125   : > { %721 = vmatmul.mubr.msk.f32.vlgmr.msra.gmra.mxu0 %vm500_vm4, %v493_v17 }
 0x128   : > { %v315_v11 = vpop.permute.xlu1 %314 }
 0x1e1   : > { %v387_v12 = vpop.f32.mrf.mxu0 }
 0x1e2   : > { %v388_v13 = vadd.f32 %v387_v12, %v315_v11 }
 0x1e3   : > { %v704_v14 = vpop.f32.mrf.mxu0 }
 0x1e4   : > { %v391_v15 = vmax.f32 %v388_v13, 0.0 }
 0x1e5   : > { %v570_v26 = vpop.f32.mrf.mxu0 }
 0x1e6   : > { %394 = vrot.lane.b32.xlu0 %v391_v15, %s877_s29 }
 0x1e7   : > { %v722_v27 = vpop.f32.mrf.mxu0 }
 0x258   : > { %v395_v16 = vpop.permute.xlu0 %394 }
 0x259   : > { %397 = vst.msk [vmem:[#allocation3] sm:$0xff] %vm294_vm1, %v395_v16 }
 0x260   : > { %v398_v18 = vld [vmem:[#allocation3] sm:$0xff] }
 0x261   : > { %406 = vrot.lane.b32.xlu0 %v398_v18, %s880_s8  ;;  %409 = vrot.lane.b32.xlu1 %v398_v18, %s881_s9  ;;  %s280_s8 = sand.u32 1, %s865_s25  }
 0x262   : > { %s669_s9 = sshll.u32 %s280_s8, 3  ;;  %s579_s19 = scalar_lea.sflag [#allocation6], %s280_s8 }
 0x265   : > { %400 = vrot.lane.b32.xlu0 %v398_v18, %s883_s14  ;;  %403 = vrot.lane.b32.xlu1 %v398_v18, %s882_s13  ;;  %s675_s13 = sshll.u32 %s946_s28, 7  ;;  %s282_s14 = scalar_lea.vmem [#allocation7], %s669_s9 }
 0x266   : > { %s592_s15 = sshll.u32 %s282_s14, 4  ;;  %s590_s18 = scalar_lea.hbm %s1085_s7, %s675_s13  ;;  %s593_s15 = int_to_ptr.vmem [resolvable:$true] %s592_s15 }
 0x267   : > { %s809_s20 = scalar_lea.vmem %s593_s15, 128  ;;  %s815_s28 = scalar_lea.vmem %s814_s22, 256 }
 0x268   : > { %p810_p6 = scmp.ne.s32.totalorder %s593_s15, %s809_s20  ;;  %p816_p11 = scmp.lt.s32.totalorder %s593_s15, %s814_s22 }
 0x269   : > { %416 = vperm.xlu1 %781, %v413_v19   ;;  %497 = vperm.xlu0 %782, %v494_v20   ;;  %p817_p12 = scmp.lt.s32.totalorder %s815_s28, %s809_s20 }
 0x26a   : > { %p811_p9 = pnand %p810_p6, %p963_p5 }
 0x26b   : > { %p818_p13 = por %p817_p12, %p816_p11 }
 0x26c   : > { %p812_p10 = pneg %p811_p9 }
 0x26e   : > { %p819_p0 = pnand %p818_p13, %p812_p10 }
 0x2d3   : > { %v407_v21 = vpop.permute.xlu0 %406  ;;  %v410_v22 = vpop.permute.xlu1 %409 }
 0x2d4   : > { %706 = vmatpush3.msra.mxu1 %v410_v22 }
 0x2d5   : > { %707 = vmatprep.subr.mxu1 %v876_v0 }
 0x2d6   : > { %708 = vmatpush3.msra.mxu1 %v407_v21 }
 0x2d7   : > { %709 = vmatprep.subr.mxu1 %v876_v0  ;;  %v404_v23 = vpop.permute.xlu1 %403  ;;  %v401_v24 = vpop.permute.xlu0 %400 }
 0x2d8   : > { %710 = vmatpush3.msra.mxu1 %v404_v23 }
 0x2d9   : > { %711 = vmatprep.subr.mxu1 %v876_v0 }
 0x2da   : > { %712 = vmatpush3.msra.mxu1 %v401_v24 }
 0x2db   : > { %713 = vmatprep.subr.mxu1 %v876_v0 }
 0x2dc   : > { %714 = vmatpush3.msra.mxu1 %v398_v18 }
 0x2dd   : > { %716 = vmatmul.mubr.msk.f32.vlgmr.msra.gmra.mxu1 %vm317_vm3, %v412_v25 }
 0x2e4   : > { %v498_v28 = vpop.permute.xlu0 %497  ;;  %v417_v29 = vpop.permute.xlu1 %416 }
 0x2e5   : > { %v571_v32 = vadd.f32 %v570_v26, %v498_v28 }
 0x39d   : > { %v488_v30 = vpop.f32.mrf.mxu1 }
 0x39e   : > { %v489_v31 = vadd.f32 %v488_v30, %v417_v29 }
 0x39f   : > { %v717_v33 = vpop.f32.mrf.mxu1 }
 0x3a0   : > { %v492_v34 = vmax.f32 %v489_v31, 0.0 }
 0x3a2   : > { %v574_v35 = vadd.f32 %v571_v32, %v492_v34 }
 0x3a4   : > { %v575_v36 = vmax.f32 %v574_v35, 0.0 }
 0x3a6   : > { %577 = vst.msk [vmem:[%s282_s14] sm:$0xff] %vm576_vm5, %v575_v36 }
 0x3a7   : > { %822 = shalt.err (!%p819_p0)
}
 0x3a8   : > { %s823_s23 = scalar_lea.hbm %s590_s18, 128  ;;  %s827_s9 = scalar_lea.hbm %s1085_s7, 256 }
 0x3a9   : > { %p824_p1 = scmp.ne.s32.totalorder %s590_s18, %s823_s23  ;;  %p828_p4 = scmp.lt.s32.totalorder %s590_s18, %s1085_s7 }
 0x3aa   : > { %p829_p7 = scmp.lt.s32.totalorder %s827_s9, %s823_s23 }
 0x3ab   : > { %p825_p2 = pnand %p824_p1, %p963_p5 }
 0x3ac   : > { %p830_p8 = por %p829_p7, %p828_p4 }
 0x3ad   : > { %p826_p3 = pneg %p825_p2 }
 0x3af   : > { %p831_p6 = pnand %p830_p8, %p826_p3 }
 0x3b1   : > { %834 = shalt.err (!%p831_p6)
}
 0x3b2   : > { %727 = dma.vmem_to_hbm [thread:$0]  (%p963_p5), %s593_s15, 128, %s590_s18, %s579_s19  }
 0x3b3 PF: > { %p739_p9 = scmp.ge.s32.totalorder %s873_s27, 2  ;;  %s604_s16 = sand.u32 1, %s861_s24  }
 0x3b4   : > { %p1089_p10 = scmp.ne.s32.totalorder %s1087_s12, 0  ;;  %s605_s17 = scalar_lea.sflag [#allocation6], %s604_s16 }
 0x3b6   : > { %p734_p11 = pnand %p739_p9, %p1089_p10 }
 0x3b8   : > { %p735_p12 = pneg %p734_p11 }
 0x3ba   : > { %856 = dma.done.wait (%p735_p12), %s605_s17, 128  }
 0x3bb   : > { %858 = vsyncadd (%p735_p12), %s605_s17, 4294967168  ;;  %p18_p13 = scmp.ge.s32.totalorder %s950_s30, 4   ;;  %s1090_s24 = smov %s865_s25 }
 0x3bc   : > { %s1091_s25 = smov %s869_s26  ;;  %s1092_s26 = smov %s961_s10 }
 0x3bd   : > { %s1093_s27 = smov %s950_s30  ;;  %20 = sbr.rel (!%p18_p13) target bundleno = 4 (0x4), region = 88 }
 0x3c2   :  { %610 = vsyncpa [#allocation5], 1 }
 0x3c3   :  { %612 = vsyncpa [#allocation5 + $0x1], 1 }
 0x3c4   :  { %613 = vsyncpa [#allocation6], 1 }
 0x3c5   :  { %615 = vsyncpa [#allocation6 + $0x1], 1 }

</bundles_post_ra>
